<compile_context>
chip_gen: v7x
topology: tpu7x:2x2x1
jax: 0.10.0
libtpu: 0.0.40
codegen_flags: <defaults>
</compile_context>

<pallas_src>
import functools
import math

import jax
import jax.numpy as jnp
from jax import lax
from jax.experimental import pallas as pl
from jax.experimental.pallas import tpu as pltpu

VMEM_LIMIT = 48 * 1024 * 1024     # explicit scoped-VMEM budget (fits v5e/v6e/v7x)
TILE_T = 128                      # output time rows per conv grid step
TILE_M_MM = 256                   # rows per STFT-matmul grid step


def _cdiv(a, b):
    return -(-a // b)


def _round_up(x, m):
    return ((x + m - 1) // m) * m


# ----------------------------- Pallas kernels ------------------------------

def _conv_kernel(x_ref, w_ref, b_ref, o_ref, *, kh, kw, sw, dh, w_out, neg_slope):
    """One (batch, time-tile) grid step of a 2-D conv with taps fused in-kernel.

    x_ref: [tm + halo, sw, Wq, Cin]   phase-split, haloed time tile (bf16)
    w_ref: [kh, kw, Cin, Cout]        (bf16)
    b_ref: [1, Cout]                  (f32)
    o_ref: [tm, Wo, Cout]
    """
    tm = o_ref.shape[0]
    cout = o_ref.shape[2]
    bias = b_ref[...].astype(jnp.float32)                       # [1, Cout]

    def row(t, carry):
        acc = jnp.zeros((w_out, cout), jnp.float32)
        for i in range(kh):                                      # static unroll
            for j in range(kw):
                p = j % sw                                       # freq phase
                q = j // sw                                      # freq shift
                xs = x_ref[t + i * dh, p, pl.ds(q, w_out), :]    # [Wo, Cin]
                acc = acc + jnp.dot(xs, w_ref[i, j, :, :],
                                    preferred_element_type=jnp.float32)
        y = acc + bias
        if neg_slope is not None:
            y = jnp.where(y >= 0.0, y, neg_slope * y)
        o_ref[t, :, :] = y.astype(o_ref.dtype)
        return carry

    lax.fori_loop(0, tm, row, 0)


def _mm_kernel(x_ref, w_ref, o_ref, *, precision):
    o_ref[...] = jnp.dot(x_ref[...], w_ref[...],
                         preferred_element_type=jnp.float32,
                         precision=precision).astype(o_ref.dtype)


def pallas_matmul(x, w, out_dtype=jnp.float32, precision=None, tile_m=TILE_M_MM):
    """x: [M, K] @ w: [K, N] -> [M, N]; ragged M handled by block clipping."""
    M, K = x.shape
    K2, N = w.shape
    assert K == K2
    tm = min(tile_m, _round_up(M, 32))
    grid = (_cdiv(M, tm),)
    return pl.pallas_call(
        functools.partial(_mm_kernel, precision=precision),
        out_shape=jax.ShapeDtypeStruct((M, N), out_dtype),
        grid=grid,
        in_specs=[
            pl.BlockSpec((tm, K), lambda i: (i, 0)),
            pl.BlockSpec((K, N), lambda i: (0, 0)),
        ],
        out_specs=pl.BlockSpec((tm, N), lambda i: (i, 0)),
        compiler_params=pltpu.CompilerParams(
            dimension_semantics=("parallel",),
            vmem_limit_bytes=VMEM_LIMIT),
    )(x, w)


# ------------------------- conv wrapper (fused im2col) ----------------------

def conv2d_nhwc(x, w, b, stride=(1, 1), dilation=(1, 1), padding=(0, 0),
                neg_slope=None, out_dtype=jnp.bfloat16, tile_t=TILE_T):
    """PyTorch-semantics Conv2d (+ optional fused LeakyReLU) on NHWC input.

    x: [B, T, W, Cin] (bf16), w: [kH, kW, Cin, Cout] (bf16), b: [1, Cout] (f32).
    This module only needs stride_h == 1 and dilation_w == 1.
    """
    B, T, W, Cin = x.shape
    kh, kw, _, Cout = w.shape
    sh, sw = stride
    dh, dw = dilation
    ph, pw = padding
    assert sh == 1 and dw == 1

    T_out = T + 2 * ph - dh * (kh - 1)              # stride_h == 1
    W_out = (W + 2 * pw - kw) // sw + 1
    halo = (kh - 1) * dh
    q_max = (kw - 1) // sw
    Wq = W_out + q_max                              # columns per freq phase

    # pad: time by ph, freq so the phase split covers every tap shift
    extra_w = max(0, Wq * sw - (W + 2 * pw))
    xp = jnp.pad(x, ((0, 0), (ph, ph), (pw, pw + extra_w), (0, 0)))
    xp = xp[:, :, : Wq * sw, :]
    Tp = T + 2 * ph

    # phase split of the freq axis -> [B, Tp, sw, Wq, Cin]
    if sw > 1:
        xp = xp.reshape(B, Tp, Wq, sw, Cin).transpose(0, 1, 3, 2, 4)
    else:
        xp = xp[:, :, None, :, :]

    # overlapping (haloed) time tiles: only ~halo/tile duplication in HBM
    tm = min(tile_t, T_out)
    nt = _cdiv(T_out, tm)
    tmh = tm + halo
    row_idx = jnp.arange(nt)[:, None] * tm + jnp.arange(tmh)[None, :]
    row_idx = jnp.minimum(row_idx, Tp - 1)
    x_tiled = jnp.take(xp, row_idx, axis=1)                 # [B, nt, tmh, sw, Wq, Cin]
    x_tiled = x_tiled.reshape(B * nt, tmh, sw, Wq, Cin)

    out = pl.pallas_call(
        functools.partial(_conv_kernel, kh=kh, kw=kw, sw=sw, dh=dh,
                          w_out=W_out, neg_slope=neg_slope),
        out_shape=jax.ShapeDtypeStruct((B, T_out, W_out, Cout), out_dtype),
        grid=(B * nt,),
        in_specs=[
            pl.BlockSpec((None, tmh, sw, Wq, Cin), lambda g: (g, 0, 0, 0, 0)),
            pl.BlockSpec((kh, kw, Cin, Cout), lambda g: (0, 0, 0, 0)),
            pl.BlockSpec((1, Cout), lambda g: (0, 0)),
        ],
        out_specs=pl.BlockSpec((None, tm, W_out, Cout),
                               lambda g: (g // nt, g % nt, 0, 0)),
        compiler_params=pltpu.CompilerParams(
            dimension_semantics=("parallel",),
            vmem_limit_bytes=VMEM_LIMIT),
    )(x_tiled, w, b)
    return out


# ------------------------------- STFT / pool --------------------------------

def stft_features(x, n_fft, hop, win_length, out_dtype=jnp.bfloat16):
    """torchaudio Spectrogram(power=None, center=False, normalized=True, hann),
    then cat([real, imag], ch) and rearrange 'b c w t -> b c t w'.
    Returns NHWC [B, T, F, 2C] with channels [real_0..real_{C-1}, imag_0..]."""
    B, C, L = x.shape
    assert win_length == n_fft
    F_ = n_fft // 2 + 1
    T = (L - n_fft) // hop + 1

    n = jnp.arange(win_length, dtype=jnp.float32)
    window = 0.5 * (1.0 - jnp.cos(2.0 * jnp.pi * n / win_length))   # periodic hann
    norm = jnp.sqrt(jnp.sum(window ** 2))                           # "window" norm
    k = jnp.arange(F_, dtype=jnp.float32)
    ang = 2.0 * jnp.pi * jnp.outer(n, k) / n_fft                    # [n_fft, F]
    dft_real = (window[:, None] * jnp.cos(ang)) / norm
    dft_imag = (-window[:, None] * jnp.sin(ang)) / norm
    dft = jnp.concatenate([dft_real, dft_imag], axis=1)             # [n_fft, 2F]

    idx = jnp.arange(T)[:, None] * hop + jnp.arange(n_fft)[None, :]
    frames = x[:, :, idx].reshape(B * C * T, n_fft).astype(jnp.float32)
    spec = pallas_matmul(frames, dft, out_dtype=out_dtype,
                         precision=lax.Precision.HIGHEST)
    spec = spec.reshape(B, C, T, 2 * F_)
    real = jnp.transpose(spec[..., :F_], (0, 2, 3, 1))              # [B, T, F, C]
    imag = jnp.transpose(spec[..., F_:], (0, 2, 3, 1))
    return jnp.concatenate([real, imag], axis=-1)                   # [B, T, F, 2C]


def avgpool2d_nhwc(x, kernel=4, stride=2, padding=1):
    """AvgPool2d(kernel, stride, padding, count_include_pad=False), NHWC, in jnp."""
    B, H, W, C = x.shape
    Ho = (H + 2 * padding - kernel) // stride + 1
    Wo = (W + 2 * padding - kernel) // stride + 1
    xp = jnp.pad(x, ((0, 0), (padding, padding), (padding, padding), (0, 0)))
    s = jnp.zeros((B, Ho, Wo, C), x.dtype)
    for i in range(kernel):
        for j in range(kernel):
            s = s + xp[:, i: i + stride * (Ho - 1) + 1: stride,
                          j: j + stride * (Wo - 1) + 1: stride, :]
    hi = jnp.arange(Ho) * stride - padding
    wi = jnp.arange(Wo) * stride - padding
    h_valid = jnp.minimum(hi + kernel, H) - jnp.maximum(hi, 0)
    w_valid = jnp.minimum(wi + kernel, W) - jnp.maximum(wi, 0)
    counts = (h_valid[:, None] * w_valid[None, :]).astype(x.dtype)  # analytic counts
    return s / counts[None, :, :, None]


# ----------------------------- parameter setup ------------------------------

def get_2d_padding(kernel_size, dilation=(1, 1)):
    return ((kernel_size[0] - 1) * dilation[0] // 2,
            (kernel_size[1] - 1) * dilation[1] // 2)


def _make_conv(key, kh, kw, cin, cout):
    kw_, kb_ = jax.random.split(key)
    fan_in = kh * kw * cin
    w = (jax.random.normal(kw_, (kh, kw, cin, cout), jnp.float32)
         / math.sqrt(fan_in)).astype(jnp.bfloat16)
    b = (jax.random.normal(kb_, (cout,), jnp.float32) * 0.01).reshape(1, cout)
    return w, b


def init_disc_params(key, filters, in_channels=1, out_channels=1,
                     kernel_size=(3, 9), dilations=(1, 2, 4), stride=(1, 2),
                     max_filters=1024, filters_scale=1):
    spec_channels = 2 * in_channels
    layers = []
    k0, key = jax.random.split(key)
    layers.append(dict(w_b=_make_conv(k0, kernel_size[0], kernel_size[1],
                                      spec_channels, filters),
                       stride=(1, 1), dilation=(1, 1),
                       padding=get_2d_padding(kernel_size)))
    in_chs = min(filters_scale * filters, max_filters)
    for i, d in enumerate(dilations):
        out_chs = min(filters_scale ** (i + 1) * filters, max_filters)
        ki, key = jax.random.split(key)
        layers.append(dict(w_b=_make_conv(ki, kernel_size[0], kernel_size[1],
                                          in_chs, out_chs),
                           stride=stride, dilation=(d, 1),
                           padding=get_2d_padding(kernel_size, (d, 1))))
        in_chs = out_chs
    out_chs = min(filters_scale ** (len(dilations) + 1) * filters, max_filters)
    k4, key = jax.random.split(key)
    layers.append(dict(w_b=_make_conv(k4, kernel_size[0], kernel_size[0],
                                      in_chs, out_chs),
                       stride=(1, 1), dilation=(1, 1),
                       padding=get_2d_padding((kernel_size[0], kernel_size[0]))))
    kp, key = jax.random.split(key)
    conv_post = dict(w_b=_make_conv(kp, kernel_size[0], kernel_size[0],
                                    out_chs, out_channels),
                     stride=(1, 1), dilation=(1, 1),
                     padding=get_2d_padding((kernel_size[0], kernel_size[0])))
    return dict(convs=layers, conv_post=conv_post)


# --------------------------------- forward ----------------------------------

def discriminator_stft_forward(params, x, n_fft, hop, win, negative_slope=0.2):
    z = stft_features(x, n_fft, hop, win)                 # [B, T, F, 2C] bf16
    fmap = []
    for layer in params["convs"]:
        w, b = layer["w_b"]
        z = conv2d_nhwc(z, w, b, layer["stride"], layer["dilation"],
                        layer["padding"], neg_slope=negative_slope,
                        out_dtype=jnp.bfloat16)
        fmap.append(z)
    lp = params["conv_post"]
    w, b = lp["w_b"]
    z = conv2d_nhwc(z, w, b, lp["stride"], lp["dilation"], lp["padding"],
                    neg_slope=None, out_dtype=jnp.float32)
    return z, fmap


def multi_scale_stft_discriminator_forward(params_list, x, n_ffts, hops, wins,
                                           return_intermediates=True):
    outs = []
    for params, n_fft, hop, win in zip(params_list, n_ffts, hops, wins):
        logit, fmap = discriminator_stft_forward(params, x, n_fft, hop, win)
        pooled = avgpool2d_nhwc(logit, kernel=4, stride=2, padding=1)
        pooled_nchw = jnp.transpose(pooled, (0, 3, 1, 2))          # NCHW, f32
        if return_intermediates:
            fmap_nchw = [jnp.transpose(f, (0, 3, 1, 2)).astype(jnp.float32)
                         for f in fmap]
            outs.append((pooled_nchw, fmap_nchw))
        else:
            outs.append(pooled_nchw)
    return outs


# ----------------------------------- main ------------------------------------

if __name__ == "__main__":
    key = jax.random.PRNGKey(0)
    kx, kp = jax.random.split(key)

    # Small config consistent with the module: 3 STFT scales, mono audio.
    batch, in_channels, out_channels, seq_len = 2, 1, 1, 256
    filters = 8
    n_ffts = [64, 128, 32]
    hop_lengths = [16, 32, 8]
    win_lengths = [64, 128, 32]

    x = jax.random.normal(kx, (batch, in_channels, seq_len), jnp.float32)

    params_list = []
    for _ in range(len(n_ffts)):
        kp, ksub = jax.random.split(kp)
        params_list.append(init_disc_params(ksub, filters,
                                            in_channels=in_channels,
                                            out_channels=out_channels))

    outs = multi_scale_stft_discriminator_forward(
        params_list, x, n_ffts, hop_lengths, win_lengths,
        return_intermediates=True)
    jax.block_until_ready(outs)
    print("KERNEL_OK")
</pallas_src>

<mosaic_0001>
module attributes {stable_mosaic.version = 11 : i64} {
  func.func @_mm_kernel(%arg0: i32, %arg1: memref<32x64xf32, #tpu.memory_space<vmem>>, %arg2: memref<64x66xf32, #tpu.memory_space<vmem>>, %arg3: memref<32x66xbf16, #tpu.memory_space<vmem>>) attributes {dimension_semantics = [#tpu.dimension_semantics<parallel>], iteration_bounds = array<i64: 1>, scalar_prefetch = 0 : i64, scratch_operands = 0 : i64, tpu.core_type = #tpu.core_type<tc>, window_params = [{transform_indices = @transform_0, window_bounds = array<i64: 32, 64>}, {pipeline_mode = #tpu.pipeline_mode<synchronous>, transform_indices = @transform_1, window_bounds = array<i64: 64, 66>}, {transform_indices = @transform_2, window_bounds = array<i64: 32, 66>}]} {
    %c0 = arith.constant 0 : index
    %c0_0 = arith.constant 0 : index
    %0 = vector.load %arg1[%c0, %c0_0] : memref<32x64xf32, #tpu.memory_space<vmem>>, vector<32x64xf32>
    %c0_1 = arith.constant 0 : index
    %c0_2 = arith.constant 0 : index
    %1 = vector.load %arg2[%c0_1, %c0_2] : memref<64x66xf32, #tpu.memory_space<vmem>>, vector<64x66xf32>
    %cst = arith.constant dense<0.000000e+00> : vector<32x66xf32>
    %2 = tpu.matmul %0, %1, %cst {dimension_numbers = #tpu.dot_dimension_numbers<[1], [0], [0], [1], [0, 0, 1, 1], [], []>, precision = #tpu.contract_precision<fp32>} : vector<32x64xf32>, vector<64x66xf32>, vector<32x66xf32> -> vector<32x66xf32>
    %3 = arith.truncf %2 : vector<32x66xf32> to vector<32x66xbf16>
    %c0_3 = arith.constant 0 : index
    %c0_4 = arith.constant 0 : index
    %4 = vector.load %arg3[%c0_3, %c0_4] : memref<32x66xbf16, #tpu.memory_space<vmem>>, vector<32x66xbf16>
    tpu.vector_store %arg3[%c0_3, %c0_4], %3 {strides = array<i32>} : memref<32x66xbf16, #tpu.memory_space<vmem>>, vector<32x66xbf16>,
    return
  }
  func.func @transform_0(%arg0: i32) -> (i32, i32) {
    %c0_i32 = arith.constant 0 : i32
    %c0_i32_0 = arith.constant 0 : i32
    return %arg0, %c0_i32 : i32, i32
  }
  func.func @transform_1(%arg0: i32) -> (i32, i32) {
    %c0_i32 = arith.constant 0 : i32
    %c0_i32_0 = arith.constant 0 : i32
    %c0_i32_1 = arith.constant 0 : i32
    return %c0_i32, %c0_i32_0 : i32, i32
  }
  func.func @transform_2(%arg0: i32) -> (i32, i32) {
    %c0_i32 = arith.constant 0 : i32
    %c0_i32_0 = arith.constant 0 : i32
    return %arg0, %c0_i32 : i32, i32
  }
}

</mosaic_0001>

<bundles_post_ra>
// kernel: tpu_custom_call.1
= control target key start
LH: loop header
LB: loop body
LE: loop exit
PB: predicated region body
PF: predicated region fallthrough
CT: control target
= control target key end

     0   :  { %7 = vsyncpa [#allocation3], 0  ;;  %s1363_s0 = inlined_call_operand.hbm [shape: f32[26,64], index: 0, kind: input, shape index: {}]   ;;  %s1364_s1 = inlined_call_operand.hbm [shape: f32[64,66], index: 1, kind: input, shape index: {}]   ;;  %s1365_s2 = inlined_call_operand.hbm [shape: bf16[26,66], index: 2, kind: output, shape index: {}]  }
   0x1   :  { %8 = vsyncpa [#allocation6], 0 }
   0x2   :  { %9 = vsyncpa [#allocation4], 0  ;;  %s1177_s9 = smov [#allocation2]   ;;  %s1105_s13 = scalar_lea.hbm %s1363_s0, 512 }
   0x3   :  { %s15_s10 = sshll.u32 %s1177_s9, 4  ;;  %p1106_p0 = scmp.ne.s32.totalorder %s1363_s0, %s1105_s13  ;;  %s16_s10 = int_to_ptr.vmem [resolvable:$true] %s15_s10 }
   0x4   :  { %p1109_p1 = scmp.lt.u32.totalorder %s1105_s13, %s1363_s0 }
   0x6   :  { %p1111_p2 = pnand %p1109_p1, %p1106_p0 }
   0x8   :  { %1114 = shalt.err (!%p1111_p2)
}
   0x9   :  { %s1115_s18 = scalar_lea.vmem %s16_s10, 512  ;;  %p1120_p4 = scmp.lt.s32.totalorder %s16_s10, %s16_s10 }
   0xa   :  { %p1116_p3 = scmp.ne.s32.totalorder %s16_s10, %s1115_s18  ;;  %p1121_p5 = scmp.lt.s32.totalorder %s1115_s18, %s1115_s18 }
   0xc   :  { %p1122_p6 = por %p1121_p5, %p1120_p4 }
   0xe   :  { %p1123_p7 = pnand %p1122_p6, %p1116_p3 }
  0x10   :  { %1126 = shalt.err (!%p1123_p7)
}
  0x11   :  { %s1178_s19 = smov 128   ;;  %s1179_s20 = smov 8  }
  0x12   :  { %21 = dma.hbm_to_vmem [thread:$0]  %s1363_s0, 512, %s16_s10, [#allocation3], %s1178_s19, %s1178_s19, %s1179_s20  }
  0x13   :  { %s1180_s23 = smov [#allocation5]   ;;  %s1127_s27 = scalar_lea.hbm %s1364_s1, 1024 }
  0x14   :  { %s27_s24 = sshll.u32 %s1180_s23, 4  ;;  %p1128_p8 = scmp.ne.s32.totalorder %s1364_s1, %s1127_s27  ;;  %s28_s24 = int_to_ptr.vmem [resolvable:$true] %s27_s24 }
  0x15   :  { %p1131_p9 = scmp.lt.u32.totalorder %s1127_s27, %s1364_s1 }
  0x17   :  { %p1133_p10 = pnand %p1131_p9, %p1128_p8 }
  0x19   :  { %1136 = shalt.err (!%p1133_p10)
}
  0x1a   :  { %s1137_s4 = scalar_lea.vmem %s28_s24, 1024  ;;  %p1142_p12 = scmp.lt.s32.totalorder %s28_s24, %s28_s24 }
  0x1b   :  { %p1138_p11 = scmp.ne.s32.totalorder %s28_s24, %s1137_s4  ;;  %p1143_p13 = scmp.lt.s32.totalorder %s1137_s4, %s1137_s4 }
  0x1d   :  { %p1144_p0 = por %p1143_p13, %p1142_p12 }
  0x1f   :  { %p1145_p1 = pnand %p1144_p0, %p1138_p11 }
  0x21   :  { %1148 = shalt.err (!%p1145_p1)
}
  0x22   :  { %33 = dma.hbm_to_vmem [thread:$0]  %s1364_s1, 1024, %s28_s24, [#allocation6], %s1178_s19, %s1178_s19, %s1179_s20  }
  0x23   :  { %1171 = dma.done.wait [#allocation3], 512  }
  0x24   :  { %1172 = vsyncadd [#allocation3], 4294966784 }
  0x25   :  { %1173 = dma.done.wait [#allocation6], 1024  }
  0x26   :  { %1174 = vsyncadd [#allocation6], 4294966272  ;;  %v44_v0 = vld [vmem:[#allocation5] sm:$0xff]  ;;  %v45_v1 = vld [vmem:[#allocation5 + $0x8] sm:$0xff]  ;;  %vm52_vm0 = vcmask 523264   ;;  %vm747_vm1 = vcmask 535552  }
  0x27   :  { %v46_v2 = vld [vmem:[#allocation5 + $0x10] sm:$0xff]  ;;  %v66_v3 = vand.u32 4294901760, %v44_v0  ;;  %v69_v4 = vand.u32 4294901760, %v45_v1  ;;  %v47_v5 = vld [vmem:[#allocation5 + $0x18] sm:$0xff]  ;;  %v48_v7 = vld [vmem:[#allocation5 + $0x20] sm:$0xff]  ;;  %s1181_s1 = smov [#allocation7]  }
  0x28   :  { %v72_v6 = vand.u32 4294901760, %v46_v2  ;;  %v49_v8 = vld [vmem:[#allocation5 + $0x28] sm:$0xff]  ;;  %v75_v9 = vand.u32 4294901760, %v47_v5  ;;  %v78_v10 = vand.u32 4294901760, %v48_v7  ;;  %v50_v12 = vld [vmem:[#allocation5 + $0x30] sm:$0xff]  ;;  %v1223_v13 = vld [vmem:[#allocation5 + $0x38] sm:$0xff] }
  0x29   :  { %v81_v11 = vand.u32 4294901760, %v49_v8  ;;  %v40_v14 = vld [vmem:[#allocation2] sm:$0xff]  ;;  %v1225_v15 = vpack.c.bf16 %v69_v4, %v66_v3  ;;  %v84_v16 = vand.u32 4294901760, %v50_v12  ;;  %v41_v18 = vld [vmem:[#allocation2 + $0x8] sm:$0xff]  ;;  %v87_v20 = vand.u32 4294901760, %v1223_v13  ;;  %v42_v46 = vld [vmem:[#allocation2 + $0x10] sm:$0xff] }
  0x2a   :  { %v54_v17 = vsel %vm52_vm0, %v40_v14, 0  ;;  %v1228_v19 = vpack.c.bf16 %v75_v9, %v72_v6  ;;  %v1233_v22 = vsub.f32 %v44_v0, %v66_v3  ;;  %v1239_v24 = vsub.f32 %v45_v1, %v69_v4  ;;  %v43_v52 = vld [vmem:[#allocation2 + $0x18] sm:$0xff]  ;;  %s757_s6 = sshll.u32 %s1181_s1, 4  ;;  %s758_s6 = int_to_ptr.vmem [resolvable:$true] %s757_s6 }
  0x2b   :  { %v1231_v21 = vand.u32 4294901760, %v54_v17  ;;  %983 = vmatprep.subr.bf16.mxu1 %v1225_v15  ;;  %1031 = vmatprep.subr.bf16.mxu0 %v1225_v15  ;;  %v1237_v23 = vpack.c.bf16 %v81_v11, %v78_v10  ;;  %v57_v25 = vsel %vm52_vm0, %v41_v18, 0  ;;  %v1242_v26 = vsub.f32 %v46_v2, %v72_v6  ;;  %s1149_s7 = scalar_lea.vmem %s758_s6, 256  ;;  %p1154_p3 = scmp.lt.s32.totalorder %s758_s6, %s758_s6 }
  0x2c   :  { %985 = vmatpush3.bf16.msra.mxu1 %v1225_v15  ;;  %1033 = vmatpush3.bf16.msra.mxu0 %v1225_v15  ;;  %v181_v28 = vand.u32 4294901760, %v1233_v22  ;;  %v1250_v29 = vand.u32 4294901760, %v57_v25  ;;  %v1252_v30 = vsub.f32 %v47_v5, %v75_v9  ;;  %v188_v31 = vand.u32 4294901760, %v1239_v24  ;;  %p1150_p2 = scmp.ne.s32.totalorder %s758_s6, %s1149_s7  ;;  %p1155_p4 = scmp.lt.s32.totalorder %s1149_s7, %s1149_s7 }
  0x2d   :  { %v1247_v27 = vsub.f32 %v54_v17, %v1231_v21  ;;  %987 = vmatprep.subr.bf16.mxu1 %v1228_v19  ;;  %1035 = vmatprep.subr.bf16.mxu0 %v1228_v19  ;;  %v195_v32 = vand.u32 4294901760, %v1242_v26  ;;  %v1258_v33 = vsub.f32 %v48_v7, %v78_v10  ;;  %v1260_v34 = vsub.f32 %v49_v8, %v81_v11 }
  0x2e   :  { %v182_v36 = vsub.f32 %v1233_v22, %v181_v28  ;;  %v1265_v37 = vsub.f32 %v57_v25, %v1250_v29  ;;  %v202_v38 = vand.u32 4294901760, %v1252_v30  ;;  %v189_v39 = vsub.f32 %v1239_v24, %v188_v31  ;;  %p1156_p5 = por %p1155_p4, %p1154_p3 }
  0x2f   :  { %v140_v35 = vand.u32 4294901760, %v1247_v27  ;;  %v196_v40 = vsub.f32 %v1242_v26, %v195_v32  ;;  %v209_v41 = vand.u32 4294901760, %v1258_v33  ;;  %v1278_v47 = vpack.c.bf16 %v87_v20, %v84_v16 }
  0x30   :  { %989 = vmatpush3.bf16.msra.mxu1 %v1228_v19  ;;  %1037 = vmatpush3.bf16.msra.mxu0 %v1228_v19  ;;  %v183_v43 = vand.u32 4294901760, %v182_v36  ;;  %v150_v44 = vand.u32 4294901760, %v1265_v37  ;;  %v203_v45 = vsub.f32 %v1252_v30, %v202_v38  ;;  %v190_v48 = vand.u32 4294901760, %v189_v39  ;;  %p1157_p6 = pnand %p1156_p5, %p1150_p2 }
  0x31   :  { %v141_v42 = vsub.f32 %v1247_v27, %v140_v35  ;;  %991 = vmatprep.subr.bf16.mxu1 %v1237_v23  ;;  %1039 = vmatprep.subr.bf16.mxu0 %v1237_v23  ;;  %v1046_v50 = vpack.c.bf16 %v188_v31, %v181_v28  ;;  %v216_v51 = vand.u32 4294901760, %v1260_v34  ;;  %v197_v54 = vand.u32 4294901760, %v196_v40 }
  0x32   :  { %932 = vmatprep.mubr.f32.mxu0 %v140_v35  ;;  %v151_v53 = vsub.f32 %v1265_v37, %v150_v44  ;;  %v60_v55 = vsel %vm52_vm0, %v42_v46, 0  ;;  %v1283_v56 = vsub.f32 %v50_v12, %v84_v16  ;;  %v998_v57 = vpack.c.bf16 %v190_v48, %v183_v43 }
  0x33   :  { %v142_v49 = vand.u32 4294901760, %v141_v42  ;;  %v204_v58 = vand.u32 4294901760, %v203_v45  ;;  %v210_v59 = vsub.f32 %v1258_v33, %v209_v41  ;;  %v217_v60 = vsub.f32 %v1260_v34, %v216_v51 }
  0x34   :  { %993 = vmatpush3.bf16.msra.mxu1 %v1237_v23  ;;  %1041 = vmatpush3.bf16.msra.mxu0 %v1237_v23  ;;  %v1291_v61 = vand.u32 4294901760, %v60_v55  ;;  %v223_v62 = vand.u32 4294901760, %v1283_v56  ;;  %v1295_v63 = vsub.f32 %v1223_v13, %v87_v20  ;;  %v63_v0 = vsel %vm52_vm0, %v43_v52, 0 }
  0x35   :  { %995 = vmatprep.subr.bf16.mxu1 %v1278_v47  ;;  %1043 = vmatprep.subr.bf16.mxu0 %v1278_v47  ;;  %v1298_v1 = vand.u32 4294901760, %v63_v0  ;;  %v152_v2 = vand.u32 4294901760, %v151_v53  ;;  %v1002_v5 = vpack.c.bf16 %v204_v58, %v197_v54  ;;  %v1050_v6 = vpack.c.bf16 %v202_v38, %v195_v32 }
  0x36   :  { %866 = vmatprep.mubr.f32.mxu1 %v142_v49  ;;  %v1301_v3 = vsub.f32 %v60_v55, %v1291_v61  ;;  %v230_v4 = vand.u32 4294901760, %v1295_v63  ;;  %v211_v7 = vand.u32 4294901760, %v210_v59  ;;  %v218_v9 = vand.u32 4294901760, %v217_v60 }
  0x37   :  { %v1307_v8 = vsub.f32 %v63_v0, %v1298_v1  ;;  %v224_v11 = vsub.f32 %v1283_v56, %v223_v62  ;;  %v1054_v16 = vpack.c.bf16 %v216_v51, %v209_v41  ;;  %v1014_v36 = vpack.c.bf16 %v1239_v24, %v1233_v22 }
  0x38   :  { %997 = vmatpush3.bf16.msra.mxu1 %v1278_v47  ;;  %1045 = vmatpush3.bf16.msra.mxu0 %v1278_v47  ;;  %v160_v10 = vand.u32 4294901760, %v1301_v3  ;;  %v231_v12 = vsub.f32 %v1295_v63, %v230_v4  ;;  %v1006_v18 = vpack.c.bf16 %v218_v9, %v211_v7  ;;  %v1058_v35 = vpack.c.bf16 %v230_v4, %v223_v62 }
  0x39   :  { %999 = vmatprep.subr.bf16.mxu1 %v998_v57  ;;  %1047 = vmatprep.subr.bf16.mxu0 %v1046_v50  ;;  %v170_v13 = vand.u32 4294901760, %v1307_v8  ;;  %v225_v25 = vand.u32 4294901760, %v224_v11  ;;  %v1018_v38 = vpack.c.bf16 %v1252_v30, %v1242_v26  ;;  %v1022_v22 = vpack.c.bf16 %v1260_v34, %v1258_v33 }
  0x3a   :  { %v161_v14 = vsub.f32 %v1301_v3, %v160_v10  ;;  %v232_v28 = vand.u32 4294901760, %v231_v12 }
  0x3b   :  { %867 = vmatmul.mubr.f32.vlgmr.msra.gmra.mrb[0].mxu1 %v152_v2  ;;  %933 = vmatmul.mubr.f32.vlgmr.msra.gmra.mrb[0].mxu0 %v150_v44  ;;  %v171_v17 = vsub.f32 %v1307_v8, %v170_v13 }
  0x3c   :  { %1001 = vmatpush3.bf16.msra.mxu1 %v998_v57  ;;  %1049 = vmatpush3.bf16.msra.mxu0 %v1046_v50  ;;  %v162_v20 = vand.u32 4294901760, %v161_v14  ;;  %v1010_v32 = vpack.c.bf16 %v232_v28, %v225_v25 }
  0x3d   :  { %1003 = vmatprep.subr.bf16.mxu1 %v1002_v5  ;;  %1051 = vmatprep.subr.bf16.mxu0 %v1050_v6  ;;  %v172_v31 = vand.u32 4294901760, %v171_v17 }
  0x3e   :  { %935 = vmatprep.mubr.f32.mxu0 %v160_v10  ;;  %869 = vmatprep.mubr.f32.mxu1 %v162_v20 }
  0x3f   :  { %936 = vmatmul.mubr.f32.gmra.mrb[2].mxu0 %v170_v13  ;;  %870 = vmatmul.mubr.f32.gmra.mrb[2].mxu1 %v172_v31 }
  0x40   :  { %1005 = vmatpush3.bf16.msra.mxu1 %v1002_v5  ;;  %1053 = vmatpush3.bf16.msra.mxu0 %v1050_v6 }
  0x41   :  { %1007 = vmatprep.subr.bf16.mxu1 %v1006_v18  ;;  %1055 = vmatprep.subr.bf16.mxu0 %v1054_v16 }
  0x42   :  { %954 = vmatprep.mubr.f32.mxu0 %v1231_v21  ;;  %888 = vmatprep.mubr.f32.mxu1 %v1231_v21 }
  0x44   :  { %1009 = vmatpush3.bf16.msra.mxu1 %v1006_v18  ;;  %1057 = vmatpush3.bf16.msra.mxu0 %v1054_v16 }
  0x45   :  { %1011 = vmatprep.subr.bf16.mxu1 %v1010_v32  ;;  %1059 = vmatprep.subr.bf16.mxu0 %v1058_v35 }
  0x48   :  { %1013 = vmatpush3.bf16.msra.mxu1 %v1010_v32  ;;  %1061 = vmatpush3.bf16.msra.mxu0 %v1058_v35 }
  0x49   :  { %1015 = vmatprep.subr.bf16.mxu1 %v1014_v36  ;;  %1063 = vmatprep.subr.bf16.mxu0 %v1225_v15 }
  0x4b   :  { %889 = vmatmul.mubr.f32.vlgmr.msra.gmra.mrb[0].mxu1 %v1250_v29  ;;  %955 = vmatmul.mubr.f32.vlgmr.msra.gmra.mrb[0].mxu0 %v1250_v29 }
  0x4c   :  { %1017 = vmatpush3.bf16.msra.mxu1 %v1014_v36  ;;  %1065 = vmatpush3.bf16.msra.mxu0 %v1225_v15  ;;  %v1026_v15 = vpack.c.bf16 %v1295_v63, %v1283_v56 }
  0x4d   :  { %1019 = vmatprep.subr.bf16.mxu1 %v1018_v38  ;;  %1067 = vmatprep.subr.bf16.mxu0 %v1228_v19 }
  0x4e   :  { %891 = vmatprep.mubr.f32.mxu1 %v1291_v61  ;;  %957 = vmatprep.mubr.f32.mxu0 %v1291_v61 }
  0x4f   :  { %892 = vmatmul.mubr.f32.gmra.mrb[2].mxu1 %v1298_v1  ;;  %958 = vmatmul.mubr.f32.gmra.mrb[2].mxu0 %v1298_v1 }
  0x50   :  { %1021 = vmatpush3.bf16.msra.mxu1 %v1018_v38  ;;  %1069 = vmatpush3.bf16.msra.mxu0 %v1228_v19 }
  0x51   :  { %1023 = vmatprep.subr.bf16.mxu1 %v1022_v22  ;;  %1071 = vmatprep.subr.bf16.mxu0 %v1237_v23 }
  0x52   :  { %910 = vmatprep.mubr.f32.mxu1 %v1247_v27  ;;  %976 = vmatprep.mubr.f32.mxu0 %v1231_v21 }
  0x54   :  { %1025 = vmatpush3.bf16.msra.mxu1 %v1022_v22  ;;  %1073 = vmatpush3.bf16.msra.mxu0 %v1237_v23 }
  0x55   :  { %1027 = vmatprep.subr.bf16.mxu1 %v1026_v15  ;;  %1075 = vmatprep.subr.bf16.mxu0 %v1278_v47 }
  0x58   :  { %1029 = vmatpush3.bf16.msra.mxu1 %v1026_v15  ;;  %1077 = vmatpush3.bf16.msra.mxu0 %v1278_v47 }
  0x5b   :  { %911 = vmatmul.mubr.f32.vlgmr.msra.gmra.mrb[0].mxu1 %v1265_v37  ;;  %977 = vmatmul.mubr.f32.vlgmr.msra.gmra.mrb[0].mxu0 %v1250_v29 }
  0x5c   :  { %913 = vmatprep.mubr.f32.mxu1 %v1301_v3  ;;  %979 = vmatprep.mubr.f32.mxu0 %v1291_v61 }
  0x5f   :  { %914 = vmatmul.mubr.f32.gmra.mrb[2].mxu1 %v1307_v8  ;;  %980 = vmatmul.mubr.f32.gmra.mrb[2].mxu0 %v1298_v1 }
 0x12e   :  { %v912_v19 = vpop.f32.mrb[0].mxu1  ;;  %v978_v21 = vpop.f32.mrb[0].mxu0 }
 0x12f   :  { %v1078_v23 = vadd.f32 %v978_v21, %v912_v19  ;;  %v391_v24 = vpop.f32.mrb[1].mxu1  ;;  %v709_v26 = vpop.f32.mrb[1].mxu0 }
 0x130   :  { %v1079_v27 = vadd.f32 %v709_v26, %v391_v24 }
 0x131   :  { %v775_v30 = vpack.c.bf16 %v1078_v23, %v1078_v23 }
 0x132   :  { %v774_v33 = vpack.c.bf16 %v1079_v27, %v1079_v27  ;;  %v915_v34 = vpop.f32.mrb[2].mxu1  ;;  %v981_v37 = vpop.f32.mrb[2].mxu0 }
 0x133   :  { %749 = vst.msk [vmem:[#allocation7 + $0x4] sm:$0xf] %vm747_vm1, %v775_v30  ;;  %v1080_v29 = vadd.f32 %v981_v37, %v915_v34  ;;  %v405_v39 = vpop.f32.mrb[3].mxu1  ;;  %v721_v40 = vpop.f32.mrb[3].mxu0 }
 0x134   :  { %748 = vst.msk [vmem:[#allocation7] sm:$0xf] %vm747_vm1, %v774_v33  ;;  %v1081_v41 = vadd.f32 %v721_v40, %v405_v39 }
 0x135   :  { %v777_v42 = vpack.c.bf16 %v1080_v29, %v1080_v29 }
 0x136   :  { %v776_v43 = vpack.c.bf16 %v1081_v41, %v1081_v41 }
 0x137   :  { %751 = vst.msk [vmem:[#allocation7 + $0xc] sm:$0xf] %vm747_vm1, %v777_v42 }
 0x138   :  { %750 = vst.msk [vmem:[#allocation7 + $0x8] sm:$0xf] %vm747_vm1, %v776_v43 }
 0x139   :  { %1160 = shalt.err (!%p1157_p6)
}
 0x13a   :  { %s1161_s10 = scalar_lea.hbm %s1365_s2, 256 }
 0x13b   :  { %p1162_p7 = scmp.ne.s32.totalorder %s1365_s2, %s1161_s10  ;;  %p1165_p8 = scmp.lt.u32.totalorder %s1161_s10, %s1365_s2 }
 0x13d   :  { %p1167_p9 = pnand %p1165_p8, %p1162_p7 }
 0x13f   :  { %1170 = shalt.err (!%p1167_p9)
}
 0x140   :  { %s1182_s15 = smov 64   ;;  %s1183_s16 = smov 4  }
 0x141   :  { %763 = dma.vmem_to_hbm [thread:$0]  %s758_s6, 256, %s1365_s2, [#allocation4], %s1182_s15, %s1182_s15, %s1183_s16  }
 0x142   :  { %1175 = dma.done.wait [#allocation4], 256  }
 0x143   :  { %1176 = vsyncadd [#allocation4], 4294967040 }
 0x144   :  { %767 = vsyncpa [#allocation3], 1 }
 0x145   :  { %768 = vsyncpa [#allocation6], 1 }
 0x146   :  { %769 = vsyncpa [#allocation4], 1 }

</bundles_post_ra>
